<compile_context>
chip_gen: v5e
topology: v5e:2x2
jax: 0.10.0
libtpu: 0.0.40
codegen_flags: <defaults>
</compile_context>

<pallas_src>
import jax
import jax.numpy as jnp
from jax.experimental import pallas as pl
from jax.experimental.pallas import tpu as pltpu


def film_kernel(cond_ref, feat_ref, w_ref, b_ref, o_ref):
    # Native-dtype operands straight to the MXU; accumulate in f32.
    cond = cond_ref[...]

    gamma = jnp.dot(cond, w_ref[0], preferred_element_type=jnp.float32)
    gamma = gamma + b_ref[0].astype(jnp.float32)
    beta = jnp.dot(cond, w_ref[1], preferred_element_type=jnp.float32)
    beta = beta + b_ref[1].astype(jnp.float32)

    out_dtype = jnp.dtype(o_ref.dtype)
    if out_dtype == jnp.dtype(jnp.bfloat16):
        # bf16 FMA tail: one bf16 rounding, which matches the bf16 output.
        o_ref[...] = (gamma.astype(out_dtype) * feat_ref[...]
                      + beta.astype(out_dtype))
    else:
        o_ref[...] = (gamma * feat_ref[...].astype(jnp.float32)
                      + beta).astype(out_dtype)


def _pick_tile(dim, requested):
    """Full extent when the array is small (always layout-legal), else the
    requested tile (a multiple of 8/128, so padded tail tiles stay legal and
    Pallas masks the partial store)."""
    return dim if dim <= requested else requested


def _nbytes(shape, dtype):
    n = 1
    for s in shape:
        n *= s
    return n * jnp.dtype(dtype).itemsize


def film_layer(features, condition, params, *, block_rows=512, block_cols=512):
    """FiLM forward: gamma(condition) * features + beta(condition).

    features:  [B, feature_dim]    condition: [B, condition_dim]
    params: (w [2, C, F], b [2, 1, F]) -- plane 0 is gamma_fc, plane 1 is
            beta_fc, both stored pre-transposed as [in, out].
    """
    w, b = params
    B, F = features.shape
    Bc, C = condition.shape
    assert B == Bc
    assert w.shape == (2, C, F) and b.shape == (2, 1, F)

    br = _pick_tile(B, block_rows)    # row tile (multiple of 8 when tiled)
    bc = _pick_tile(F, block_cols)    # column tile (multiple of 128 when tiled)
    # Columns are the OUTER grid axis: weight stripes are reused across the
    # inner row loop and v7x megacore gets >=2 steps even for tiny batches.
    grid = (pl.cdiv(F, bc), pl.cdiv(B, br))

    # Explicit VMEM budget: double-buffered cond/feat/out tiles + weight/bias
    # stripes + in-kernel f32 temporaries (gamma, beta, upcasts), with slack.
    budget = (2 * _nbytes((br, C), condition.dtype)
              + 2 * _nbytes((br, bc), features.dtype)
              + 2 * _nbytes((br, bc), features.dtype)
              + 2 * _nbytes((2, C, bc), w.dtype)
              + 2 * _nbytes((2, 1, bc), b.dtype)
              + 4 * br * bc * 4)
    vmem_limit = int(min(max(2 * budget, 32 << 20), 56 << 20))

    return pl.pallas_call(
        film_kernel,
        out_shape=jax.ShapeDtypeStruct((B, F), features.dtype),
        grid_spec=pltpu.PrefetchScalarGridSpec(
            num_scalar_prefetch=0,
            grid=grid,
            in_specs=[
                pl.BlockSpec((br, C), lambda j, i: (i, 0)),        # condition
                pl.BlockSpec((br, bc), lambda j, i: (i, j)),       # features
                pl.BlockSpec((2, C, bc), lambda j, i: (0, 0, j)),  # [Wg; Wb]
                pl.BlockSpec((2, 1, bc), lambda j, i: (0, 0, j)),  # [bg; bb]
            ],
            out_specs=pl.BlockSpec((br, bc), lambda j, i: (i, j)),
        ),
        compiler_params=pltpu.CompilerParams(
            dimension_semantics=("parallel", "parallel"),
            vmem_limit_bytes=vmem_limit,
        ),
    )(condition, features, w, b)


def init_film_params(key, feature_dim, condition_dim, dtype=jnp.float32):
    """Deterministic init mimicking nn.Linear (uniform +-1/sqrt(fan_in)).
    gamma_fc / beta_fc weights are stacked into one [2, C, F] tensor (stored
    transposed as [in, out]); biases into [2, 1, F]."""
    k = jax.random.split(key, 4)
    bound = 1.0 / (condition_dim ** 0.5)
    wg = jax.random.uniform(k[0], (condition_dim, feature_dim), jnp.float32, -bound, bound)
    bg = jax.random.uniform(k[1], (1, feature_dim), jnp.float32, -bound, bound)
    wb = jax.random.uniform(k[2], (condition_dim, feature_dim), jnp.float32, -bound, bound)
    bb = jax.random.uniform(k[3], (1, feature_dim), jnp.float32, -bound, bound)
    w = jnp.stack([wg, wb], axis=0).astype(dtype)   # [2, C, F]
    b = jnp.stack([bg, bb], axis=0).astype(dtype)   # [2, 1, F]
    return (w, b)


class FILMLayer:
    """JAX/Pallas port of the PyTorch FILMLayer module."""

    def __init__(self, key, feature_dim, condition_dim, dtype=jnp.float32):
        self.feature_dim = feature_dim
        self.condition_dim = condition_dim
        self.params = init_film_params(key, feature_dim, condition_dim, dtype)

    def __call__(self, features, condition_input):
        return film_layer(features, condition_input, self.params)


def _reference_film(features, condition, params):
    w, b = params
    wf = w.astype(jnp.float32)
    bf = b.astype(jnp.float32)
    cf = condition.astype(jnp.float32)
    ff = features.astype(jnp.float32)
    gamma = cf @ wf[0] + bf[0]
    beta = cf @ wf[1] + bf[1]
    return gamma * ff + beta


if __name__ == "__main__":
    key = jax.random.PRNGKey(0)
    kp, kf, kc = jax.random.split(key, 3)

    B = 16             # small batch of rows
    FEATURE_DIM = 256  # lane-dense (multiple of 128)
    COND_DIM = 128

    features = jax.random.normal(kf, (B, FEATURE_DIM), jnp.float32)
    condition = jax.random.normal(kc, (B, COND_DIM), jnp.float32)

    # float32 path (exactness check).
    model = FILMLayer(kp, FEATURE_DIM, COND_DIM, dtype=jnp.float32)
    out = model(features, condition)
    jax.block_until_ready(out)
    ref = _reference_film(features, condition, model.params)
    assert out.shape == (B, FEATURE_DIM)
    assert jnp.allclose(out, ref, atol=1e-5, rtol=1e-5)

    # bfloat16 path (native-dtype MXU matmul + bf16 FMA tail).
    model_bf16 = FILMLayer(kp, FEATURE_DIM, COND_DIM, dtype=jnp.bfloat16)
    feat_bf16 = features.astype(jnp.bfloat16)
    cond_bf16 = condition.astype(jnp.bfloat16)
    out_bf16 = model_bf16(feat_bf16, cond_bf16)
    jax.block_until_ready(out_bf16)
    ref_bf16 = _reference_film(feat_bf16, cond_bf16, model_bf16.params)
    assert out_bf16.dtype == jnp.bfloat16
    assert jnp.allclose(out_bf16.astype(jnp.float32), ref_bf16,
                        atol=1e-1, rtol=5e-2)

    print("KERNEL_OK")
</pallas_src>

<mosaic_0001>
module attributes {stable_mosaic.version = 11 : i64} {
  func.func @film_kernel(%arg0: i32, %arg1: i32, %arg2: memref<16x128xf32, #tpu.memory_space<vmem>>, %arg3: memref<16x256xf32, #tpu.memory_space<vmem>>, %arg4: memref<2x128x256xf32, #tpu.memory_space<vmem>>, %arg5: memref<2x1x256xf32, #tpu.memory_space<vmem>>, %arg6: memref<16x256xf32, #tpu.memory_space<vmem>>) attributes {dimension_semantics = [#tpu.dimension_semantics<parallel>, #tpu.dimension_semantics<parallel>], iteration_bounds = array<i64: 1, 1>, scalar_prefetch = 0 : i64, scratch_operands = 0 : i64, tpu.core_type = #tpu.core_type<tc>, window_params = [{transform_indices = @transform_0, window_bounds = array<i64: 16, 128>}, {transform_indices = @transform_1, window_bounds = array<i64: 16, 256>}, {transform_indices = @transform_2, window_bounds = array<i64: 2, 128, 256>}, {transform_indices = @transform_3, window_bounds = array<i64: 2, 1, 256>}, {transform_indices = @transform_4, window_bounds = array<i64: 16, 256>}]} {
    %c0 = arith.constant 0 : index
    %c0_0 = arith.constant 0 : index
    %0 = vector.load %arg2[%c0, %c0_0] : memref<16x128xf32, #tpu.memory_space<vmem>>, vector<16x128xf32>
    %c0_1 = arith.constant 0 : index
    %c0_2 = arith.constant 0 : index
    %c0_3 = arith.constant 0 : index
    %1 = vector.load %arg4[%c0_1, %c0_2, %c0_3] : memref<2x128x256xf32, #tpu.memory_space<vmem>>, vector<1x128x256xf32>
    %2 = vector.shape_cast %1 : vector<1x128x256xf32> to vector<128x256xf32>
    %cst = arith.constant dense<0.000000e+00> : vector<16x256xf32>
    %3 = tpu.matmul %0, %2, %cst {dimension_numbers = #tpu.dot_dimension_numbers<[1], [0], [0], [1], [0, 0, 1, 1], [], []>} : vector<16x128xf32>, vector<128x256xf32>, vector<16x256xf32> -> vector<16x256xf32>
    %c0_4 = arith.constant 0 : index
    %c0_5 = arith.constant 0 : index
    %c0_6 = arith.constant 0 : index
    %4 = vector.load %arg5[%c0_4, %c0_5, %c0_6] : memref<2x1x256xf32, #tpu.memory_space<vmem>>, vector<1x1x256xf32>
    %5 = vector.shape_cast %4 : vector<1x1x256xf32> to vector<1x256xf32>
    %6 = vector.broadcast %5 : vector<1x256xf32> to vector<16x256xf32>
    %7 = arith.addf %3, %6 : vector<16x256xf32>
    %c1 = arith.constant 1 : index
    %c0_7 = arith.constant 0 : index
    %c0_8 = arith.constant 0 : index
    %8 = vector.load %arg4[%c1, %c0_7, %c0_8] : memref<2x128x256xf32, #tpu.memory_space<vmem>>, vector<1x128x256xf32>
    %9 = vector.shape_cast %8 : vector<1x128x256xf32> to vector<128x256xf32>
    %cst_9 = arith.constant dense<0.000000e+00> : vector<16x256xf32>
    %10 = tpu.matmul %0, %9, %cst_9 {dimension_numbers = #tpu.dot_dimension_numbers<[1], [0], [0], [1], [0, 0, 1, 1], [], []>} : vector<16x128xf32>, vector<128x256xf32>, vector<16x256xf32> -> vector<16x256xf32>
    %c1_10 = arith.constant 1 : index
    %c0_11 = arith.constant 0 : index
    %c0_12 = arith.constant 0 : index
    %11 = vector.load %arg5[%c1_10, %c0_11, %c0_12] : memref<2x1x256xf32, #tpu.memory_space<vmem>>, vector<1x1x256xf32>
    %12 = vector.shape_cast %11 : vector<1x1x256xf32> to vector<1x256xf32>
    %13 = vector.broadcast %12 : vector<1x256xf32> to vector<16x256xf32>
    %14 = arith.addf %10, %13 : vector<16x256xf32>
    %c0_13 = arith.constant 0 : index
    %c0_14 = arith.constant 0 : index
    %15 = vector.load %arg3[%c0_13, %c0_14] : memref<16x256xf32, #tpu.memory_space<vmem>>, vector<16x256xf32>
    %16 = arith.mulf %7, %15 : vector<16x256xf32>
    %17 = arith.addf %16, %14 : vector<16x256xf32>
    %c0_15 = arith.constant 0 : index
    %c0_16 = arith.constant 0 : index
    %18 = vector.load %arg6[%c0_15, %c0_16] : memref<16x256xf32, #tpu.memory_space<vmem>>, vector<16x256xf32>
    tpu.vector_store %arg6[%c0_15, %c0_16], %17 {strides = array<i32>} : memref<16x256xf32, #tpu.memory_space<vmem>>, vector<16x256xf32>,
    return
  }
  func.func @transform_0(%arg0: i32, %arg1: i32) -> (i32, i32) {
    %c0_i32 = arith.constant 0 : i32
    %c0_i32_0 = arith.constant 0 : i32
    return %arg1, %c0_i32 : i32, i32
  }
  func.func @transform_1(%arg0: i32, %arg1: i32) -> (i32, i32) {
    %c0_i32 = arith.constant 0 : i32
    return %arg1, %arg0 : i32, i32
  }
  func.func @transform_2(%arg0: i32, %arg1: i32) -> (i32, i32, i32) {
    %c0_i32 = arith.constant 0 : i32
    %c0_i32_0 = arith.constant 0 : i32
    %c0_i32_1 = arith.constant 0 : i32
    return %c0_i32, %c0_i32_0, %arg0 : i32, i32, i32
  }
  func.func @transform_3(%arg0: i32, %arg1: i32) -> (i32, i32, i32) {
    %c0_i32 = arith.constant 0 : i32
    %c0_i32_0 = arith.constant 0 : i32
    %c0_i32_1 = arith.constant 0 : i32
    return %c0_i32, %c0_i32_0, %arg0 : i32, i32, i32
  }
  func.func @transform_4(%arg0: i32, %arg1: i32) -> (i32, i32) {
    %c0_i32 = arith.constant 0 : i32
    return %arg1, %arg0 : i32, i32
  }
}

</mosaic_0001>

<bundles_post_ra>
// kernel: tpu_custom_call.1
= control target key start
LH: loop header
LB: loop body
LE: loop exit
PB: predicated region body
PF: predicated region fallthrough
CT: control target
= control target key end

     0   :  { %9 = vsyncpa [#allocation3], 0  ;;  %s489_s0 = inlined_call_operand.hbm [shape: f32[16,128], index: 0, kind: input, shape index: {}]   ;;  %s490_s1 = inlined_call_operand.hbm [shape: f32[16,256], index: 1, kind: input, shape index: {}]   ;;  %s491_s2 = inlined_call_operand.hbm [shape: f32[2,128,256], index: 2, kind: input, shape index: {}]   ;;  %s492_s3 = inlined_call_operand.hbm [shape: f32[2,1,256], index: 3, kind: input, shape index: {}]   ;;  %s493_s4 = inlined_call_operand.hbm [shape: f32[16,256], index: 4, kind: output, shape index: {}]  }
   0x1   :  { %10 = vsyncpa [#allocation6], 0 }
   0x2   :  { %11 = vsyncpa [#allocation9], 0  ;;  %s30_s17 = sshll.u32 %s490_s1, 4  ;;  %s31_s17 = int_to_ptr.hbm [resolvable:$true] %s30_s17 }
   0x3   :  { %12 = vsyncpa [#allocation4], 0  ;;  %s429_s18 = smov [#allocation5]   ;;  %s17_s22 = sshll.u32 %s489_s0, 4  ;;  %s18_s22 = int_to_ptr.hbm [resolvable:$true] %s17_s22 }
   0x4   :  { %s32_s19 = sshll.u32 %s429_s18, 4  ;;  %s430_s23 = smov 256   ;;  %s33_s19 = int_to_ptr.vmem [resolvable:$true] %s32_s19 }
   0x5   :  { %s431_s24 = smov 16   ;;  %s432_s25 = smov [#allocation2]  }
   0x6   :  { %38 = dma.hbm_to_vmem [thread:$0]  %s31_s17, 512, %s33_s19, [#allocation6], %s430_s23, %s430_s23, %s431_s24  }
   0x7   :  { %s19_s26 = sshll.u32 %s432_s25, 4  ;;  %s433_s1 = smov 128   ;;  %s20_s26 = int_to_ptr.vmem [resolvable:$true] %s19_s26 }
   0x8   :  { %s434_s27 = smov 8   ;;  %s43_s30 = sshll.u32 %s491_s2, 4  ;;  %s44_s30 = int_to_ptr.hbm [resolvable:$true] %s43_s30 }
   0x9   :  { %25 = dma.hbm_to_vmem [thread:$0]  %s18_s22, 256, %s20_s26, [#allocation3], %s433_s1, %s433_s1, %s434_s27  }
   0xa   :  { %s435_s5 = smov [#allocation7]   ;;  %s56_s8 = sshll.u32 %s492_s3, 4  ;;  %s57_s8 = int_to_ptr.hbm [resolvable:$true] %s56_s8 }
   0xb   :  { %s45_s0 = sshll.u32 %s435_s5, 4  ;;  %s436_s9 = smov [#allocation8]   ;;  %s46_s0 = int_to_ptr.vmem [resolvable:$true] %s45_s0 }
   0xc   :  { %51 = dma.hbm_to_vmem [thread:$0]  %s44_s30, 8192, %s46_s0, [#allocation6], %s430_s23, %s430_s23, %s431_s24  }
   0xd   :  { %s58_s10 = sshll.u32 %s436_s9, 4  ;;  %s437_s11 = smov 32   ;;  %s59_s10 = int_to_ptr.vmem [resolvable:$true] %s58_s10 }
   0xe   :  { %s438_s12 = smov 2  }
   0xf   :  { %64 = dma.hbm_to_vmem [thread:$0]  %s57_s8, 64, %s59_s10, [#allocation9], %s437_s11, %s437_s11, %s438_s12  }
  0x10   :  { %421 = dma.done.wait [#allocation3], 256  }
  0x11   :  { %422 = vsyncadd [#allocation3], 4294967040 }
  0x12   :  { %423 = dma.done.wait [#allocation6], 8704  }
  0x13   :  { %424 = vsyncadd [#allocation6], 4294958592 }
  0x14   :  { %425 = dma.done.wait [#allocation9], 64  }
  0x15   :  { %426 = vsyncadd [#allocation9], 4294967232  ;;  %v198_v0 = vld [vmem:[#allocation7 + $0x1f0] sm:$0xff]  ;;  %v199_v1 = vld [vmem:[#allocation7 + $0x1f8] sm:$0xff]  ;;  %s439_s2 = smov [#allocation10]   ;;  %s275_s15 = sshll.u32 %s493_s4, 4  ;;  %s276_s15 = int_to_ptr.hbm [resolvable:$true] %s275_s15 }
  0x16   :  { %v196_v2 = vld [vmem:[#allocation7 + $0x1e0] sm:$0xff]  ;;  %207 = vmatpush.msra.mxu2 %v198_v0  ;;  %230 = vmatpush.msra.mxu3 %v199_v1  ;;  %v197_v3 = vld [vmem:[#allocation7 + $0x1e8] sm:$0xff]  ;;  %v113_v4 = vld [vmem:[#allocation7 + $0xf0] sm:$0xff]  ;;  %s273_s3 = sshll.u32 %s439_s2, 4  ;;  %s274_s3 = int_to_ptr.vmem [resolvable:$true] %s273_s3 }
  0x17   :  { %v114_v5 = vld [vmem:[#allocation7 + $0xf8] sm:$0xff]  ;;  %121 = vmatpush.msra.mxu0 %v113_v4  ;;  %v194_v6 = vld [vmem:[#allocation7 + $0x1d0] sm:$0xff]  ;;  %v111_v8 = vld [vmem:[#allocation7 + $0xe0] sm:$0xff] }
  0x18   :  { %144 = vmatpush.msra.mxu1 %v114_v5  ;;  %v195_v7 = vld [vmem:[#allocation7 + $0x1d8] sm:$0xff]  ;;  %208 = vmatpush.msra.mxu2 %v196_v2  ;;  %v112_v9 = vld [vmem:[#allocation7 + $0xe8] sm:$0xff]  ;;  %v192_v10 = vld [vmem:[#allocation7 + $0x1c0] sm:$0xff] }
  0x19   :  { %231 = vmatpush.msra.mxu3 %v197_v3  ;;  %122 = vmatpush.msra.mxu0 %v111_v8  ;;  %v193_v11 = vld [vmem:[#allocation7 + $0x1c8] sm:$0xff]  ;;  %v109_v12 = vld [vmem:[#allocation7 + $0xd0] sm:$0xff]  ;;  %v110_v13 = vld [vmem:[#allocation7 + $0xd8] sm:$0xff] }
  0x1a   :  { %145 = vmatpush.msra.mxu1 %v112_v9  ;;  %209 = vmatpush.msra.mxu2 %v194_v6  ;;  %v107_v14 = vld [vmem:[#allocation7 + $0xc0] sm:$0xff]  ;;  %v108_v15 = vld [vmem:[#allocation7 + $0xc8] sm:$0xff]  ;;  %v190_v16 = vld [vmem:[#allocation7 + $0x1b0] sm:$0xff] }
  0x1b   :  { %232 = vmatpush.msra.mxu3 %v195_v7  ;;  %123 = vmatpush.msra.mxu0 %v109_v12  ;;  %v191_v17 = vld [vmem:[#allocation7 + $0x1b8] sm:$0xff]  ;;  %v105_v18 = vld [vmem:[#allocation7 + $0xb0] sm:$0xff]  ;;  %v188_v20 = vld [vmem:[#allocation7 + $0x1a0] sm:$0xff] }
  0x1c   :  { %146 = vmatpush.msra.mxu1 %v110_v13  ;;  %210 = vmatpush.msra.mxu2 %v192_v10  ;;  %v106_v19 = vld [vmem:[#allocation7 + $0xb8] sm:$0xff]  ;;  %v189_v21 = vld [vmem:[#allocation7 + $0x1a8] sm:$0xff]  ;;  %v103_v22 = vld [vmem:[#allocation7 + $0xa0] sm:$0xff] }
  0x1d   :  { %233 = vmatpush.msra.mxu3 %v193_v11  ;;  %124 = vmatpush.msra.mxu0 %v107_v14  ;;  %v104_v23 = vld [vmem:[#allocation7 + $0xa8] sm:$0xff]  ;;  %v186_v24 = vld [vmem:[#allocation7 + $0x190] sm:$0xff]  ;;  %v187_v25 = vld [vmem:[#allocation7 + $0x198] sm:$0xff] }
  0x1e   :  { %147 = vmatpush.msra.mxu1 %v108_v15  ;;  %211 = vmatpush.msra.mxu2 %v190_v16  ;;  %v101_v26 = vld [vmem:[#allocation7 + $0x90] sm:$0xff]  ;;  %v102_v27 = vld [vmem:[#allocation7 + $0x98] sm:$0xff]  ;;  %v184_v28 = vld [vmem:[#allocation7 + $0x180] sm:$0xff] }
  0x1f   :  { %234 = vmatpush.msra.mxu3 %v191_v17  ;;  %125 = vmatpush.msra.mxu0 %v105_v18  ;;  %v185_v29 = vld [vmem:[#allocation7 + $0x188] sm:$0xff]  ;;  %v99_v30 = vld [vmem:[#allocation7 + $0x80] sm:$0xff]  ;;  %v182_v32 = vld [vmem:[#allocation7 + $0x170] sm:$0xff] }
  0x20   :  { %148 = vmatpush.msra.mxu1 %v106_v19  ;;  %212 = vmatpush.msra.mxu2 %v188_v20  ;;  %v100_v31 = vld [vmem:[#allocation7 + $0x88] sm:$0xff]  ;;  %v183_v33 = vld [vmem:[#allocation7 + $0x178] sm:$0xff]  ;;  %v97_v34 = vld [vmem:[#allocation7 + $0x70] sm:$0xff] }
  0x21   :  { %235 = vmatpush.msra.mxu3 %v189_v21  ;;  %126 = vmatpush.msra.mxu0 %v103_v22  ;;  %v98_v35 = vld [vmem:[#allocation7 + $0x78] sm:$0xff]  ;;  %v180_v36 = vld [vmem:[#allocation7 + $0x160] sm:$0xff]  ;;  %v181_v37 = vld [vmem:[#allocation7 + $0x168] sm:$0xff] }
  0x22   :  { %149 = vmatpush.msra.mxu1 %v104_v23  ;;  %213 = vmatpush.msra.mxu2 %v186_v24  ;;  %v95_v38 = vld [vmem:[#allocation7 + $0x60] sm:$0xff]  ;;  %v96_v39 = vld [vmem:[#allocation7 + $0x68] sm:$0xff]  ;;  %v178_v40 = vld [vmem:[#allocation7 + $0x150] sm:$0xff] }
  0x23   :  { %236 = vmatpush.msra.mxu3 %v187_v25  ;;  %127 = vmatpush.msra.mxu0 %v101_v26  ;;  %v179_v41 = vld [vmem:[#allocation7 + $0x158] sm:$0xff]  ;;  %v93_v42 = vld [vmem:[#allocation7 + $0x50] sm:$0xff]  ;;  %v176_v44 = vld [vmem:[#allocation7 + $0x140] sm:$0xff] }
  0x24   :  { %150 = vmatpush.msra.mxu1 %v102_v27  ;;  %214 = vmatpush.msra.mxu2 %v184_v28  ;;  %v94_v43 = vld [vmem:[#allocation7 + $0x58] sm:$0xff]  ;;  %v177_v45 = vld [vmem:[#allocation7 + $0x148] sm:$0xff]  ;;  %v91_v46 = vld [vmem:[#allocation7 + $0x40] sm:$0xff] }
  0x25   :  { %237 = vmatpush.msra.mxu3 %v185_v29  ;;  %128 = vmatpush.msra.mxu0 %v99_v30  ;;  %v92_v47 = vld [vmem:[#allocation7 + $0x48] sm:$0xff]  ;;  %v174_v48 = vld [vmem:[#allocation7 + $0x130] sm:$0xff]  ;;  %v175_v49 = vld [vmem:[#allocation7 + $0x138] sm:$0xff] }
  0x26   :  { %151 = vmatpush.msra.mxu1 %v100_v31  ;;  %215 = vmatpush.msra.mxu2 %v182_v32  ;;  %v89_v50 = vld [vmem:[#allocation7 + $0x30] sm:$0xff]  ;;  %v90_v51 = vld [vmem:[#allocation7 + $0x38] sm:$0xff]  ;;  %v172_v52 = vld [vmem:[#allocation7 + $0x120] sm:$0xff] }
  0x27   :  { %238 = vmatpush.msra.mxu3 %v183_v33  ;;  %129 = vmatpush.msra.mxu0 %v97_v34  ;;  %v173_v53 = vld [vmem:[#allocation7 + $0x128] sm:$0xff]  ;;  %v87_v54 = vld [vmem:[#allocation7 + $0x20] sm:$0xff]  ;;  %v170_v56 = vld [vmem:[#allocation7 + $0x110] sm:$0xff] }
  0x28   :  { %152 = vmatpush.msra.mxu1 %v98_v35  ;;  %216 = vmatpush.msra.mxu2 %v180_v36  ;;  %v88_v55 = vld [vmem:[#allocation7 + $0x28] sm:$0xff]  ;;  %v171_v57 = vld [vmem:[#allocation7 + $0x118] sm:$0xff]  ;;  %v85_v58 = vld [vmem:[#allocation7 + $0x10] sm:$0xff] }
  0x29   :  { %239 = vmatpush.msra.mxu3 %v181_v37  ;;  %130 = vmatpush.msra.mxu0 %v95_v38  ;;  %v86_v59 = vld [vmem:[#allocation7 + $0x18] sm:$0xff]  ;;  %v168_v60 = vld [vmem:[#allocation7 + $0x100] sm:$0xff]  ;;  %v169_v61 = vld [vmem:[#allocation7 + $0x108] sm:$0xff] }
  0x2a   :  { %153 = vmatpush.msra.mxu1 %v96_v39  ;;  %217 = vmatpush.msra.mxu2 %v178_v40  ;;  %v81_v62 = vld [vmem:[#allocation2] sm:$0xff]  ;;  %v83_v63 = vld [vmem:[#allocation7] sm:$0xff]  ;;  %v84_v0 = vld [vmem:[#allocation7 + $0x8] sm:$0xff] }
  0x2b   :  { %240 = vmatpush.msra.mxu3 %v179_v41  ;;  %131 = vmatpush.msra.mxu0 %v93_v42  ;;  %v82_v1 = vld [vmem:[#allocation2 + $0x8] sm:$0xff]  ;;  %v115_v2 = vld [vmem:[#allocation8] sm:$0x3]  ;;  %v201_v5 = vld [vmem:[#allocation8 + $0x2] sm:$0x3] }
  0x2c   :  { %154 = vmatpush.msra.mxu1 %v94_v43  ;;  %218 = vmatpush.msra.mxu2 %v176_v44  ;;  %v117_v3 = vperm.slane %v115_v2, 0  ;;  %v118_v4 = vperm.slane %v115_v2, 1  ;;  %v253_v7 = vld [vmem:[#allocation5] sm:$0xff]  ;;  %v254_v9 = vld [vmem:[#allocation5 + $0x8] sm:$0xff]  ;;  %v203_v12 = vperm.slane %v201_v5, 0  ;;  %v204_v13 = vperm.slane %v201_v5, 1 }
  0x2d   :  { %241 = vmatpush.msra.mxu3 %v177_v45  ;;  %132 = vmatpush.msra.mxu0 %v91_v46  ;;  %v255_v23 = vld [vmem:[#allocation5 + $0x10] sm:$0xff]  ;;  %v256_v25 = vld [vmem:[#allocation5 + $0x18] sm:$0xff] }
  0x2e   :  { %155 = vmatpush.msra.mxu1 %v92_v47  ;;  %219 = vmatpush.msra.mxu2 %v174_v48 }
  0x2f   :  { %242 = vmatpush.msra.mxu3 %v175_v49  ;;  %133 = vmatpush.msra.mxu0 %v89_v50 }
  0x30   :  { %156 = vmatpush.msra.mxu1 %v90_v51  ;;  %220 = vmatpush.msra.mxu2 %v172_v52 }
  0x31   :  { %243 = vmatpush.msra.mxu3 %v173_v53  ;;  %134 = vmatpush.msra.mxu0 %v87_v54 }
  0x32   :  { %157 = vmatpush.msra.mxu1 %v88_v55  ;;  %221 = vmatpush.msra.mxu2 %v170_v56 }
  0x33   :  { %244 = vmatpush.msra.mxu3 %v171_v57  ;;  %135 = vmatpush.msra.mxu0 %v85_v58 }
  0x34   :  { %158 = vmatpush.msra.mxu1 %v86_v59  ;;  %222 = vmatpush.msra.mxu2 %v168_v60 }
  0x35   :  { %245 = vmatpush.msra.mxu3 %v169_v61  ;;  %223 = vmatmul.f32.vlgmr.msra.gmra.mxu2 %v81_v62 }
  0x36   :  { %246 = vmatmul.f32.vlgmr.msra.gmra.mxu3 %v81_v62  ;;  %136 = vmatpush.msra.mxu0 %v83_v63 }
  0x37   :  { %159 = vmatpush.msra.mxu1 %v84_v0  ;;  %137 = vmatmul.f32.vlgmr.msra.gmra.mxu0 %v81_v62 }
  0x38   :  { %160 = vmatmul.f32.vlgmr.msra.gmra.mxu1 %v81_v62 }
  0x3d   :  { %226 = vmatmul.f32.gmra.mxu2 %v82_v1 }
  0x3e   :  { %249 = vmatmul.f32.gmra.mxu3 %v82_v1 }
  0x3f   :  { %140 = vmatmul.f32.gmra.mxu0 %v82_v1 }
  0x40   :  { %163 = vmatmul.f32.gmra.mxu1 %v82_v1 }
  0xb4   :  { %v138_v6 = vpop.f32.mrf.mxu0 }
  0xb5   :  { %v161_v8 = vpop.f32.mrf.mxu1  ;;  %v139_v10 = vadd.f32 %v138_v6, %v117_v3 }
  0xb6   :  { %v162_v11 = vadd.f32 %v161_v8, %v118_v4 }
  0xb7   :  { %v257_v14 = vmul.f32 %v253_v7, %v139_v10 }
  0xb8   :  { %v258_v15 = vmul.f32 %v254_v9, %v162_v11  ;;  %v224_v16 = vpop.f32.mrf.mxu2 }
  0xb9   :  { %v247_v17 = vpop.f32.mrf.mxu3  ;;  %v225_v18 = vadd.f32 %v224_v16, %v203_v12 }
  0xba   :  { %v248_v19 = vadd.f32 %v247_v17, %v204_v13 }
  0xbb   :  { %v261_v20 = vadd.f32 %v257_v14, %v225_v18 }
  0xbc   :  { %v262_v21 = vadd.f32 %v258_v15, %v248_v19  ;;  %v141_v22 = vpop.f32.mrf.mxu0 }
  0xbd   :  { %v164_v24 = vpop.f32.mrf.mxu1  ;;  %265 = vst [vmem:[#allocation10] sm:$0xff] %v261_v20  ;;  %v142_v26 = vadd.f32 %v141_v22, %v117_v3 }
  0xbe   :  { %v165_v27 = vadd.f32 %v164_v24, %v118_v4  ;;  %266 = vst [vmem:[#allocation10 + $0x8] sm:$0xff] %v262_v21 }
  0xbf   :  { %v259_v28 = vmul.f32 %v255_v23, %v142_v26 }
  0xc0   :  { %v260_v29 = vmul.f32 %v256_v25, %v165_v27  ;;  %v227_v30 = vpop.f32.mrf.mxu2 }
  0xc1   :  { %v250_v31 = vpop.f32.mrf.mxu3  ;;  %v228_v32 = vadd.f32 %v227_v30, %v203_v12 }
  0xc2   :  { %v251_v33 = vadd.f32 %v250_v31, %v204_v13 }
  0xc3   :  { %v263_v34 = vadd.f32 %v259_v28, %v228_v32 }
  0xc4   :  { %v264_v35 = vadd.f32 %v260_v29, %v251_v33 }
  0xc5   :  { %267 = vst [vmem:[#allocation10 + $0x10] sm:$0xff] %v263_v34 }
  0xc6   :  { %268 = vst [vmem:[#allocation10 + $0x18] sm:$0xff] %v264_v35 }
  0xc7   :  { %281 = dma.vmem_to_hbm [thread:$0]  %s274_s3, 512, %s276_s15, [#allocation4], %s430_s23, %s430_s23, %s431_s24  }
  0xc8   :  { %427 = dma.done.wait [#allocation4], 512  }
  0xc9   :  { %428 = vsyncadd [#allocation4], 4294966784 }
  0xca   :  { %286 = vsyncpa [#allocation3], 1 }
  0xcb   :  { %287 = vsyncpa [#allocation6], 1 }
  0xcc   :  { %288 = vsyncpa [#allocation9], 1 }
  0xcd   :  { %289 = vsyncpa [#allocation4], 1 }

</bundles_post_ra>
